<compile_context>
chip_gen: v7x
topology: tpu7x:2x2x1
jax: 0.10.0
libtpu: 0.0.40
codegen_flags: <defaults>
</compile_context>

<pallas_src>
import numpy as np

import jax
import jax.numpy as jnp
from jax import lax
from jax.experimental import pallas as pl
from jax.experimental.pallas import tpu as pltpu


# ---------------------------------------------------------------------------
# Pallas kernel: elementwise masked row replacement (the forward hot path)
# ---------------------------------------------------------------------------
def _gd_adversary_kernel(*refs):
    # Leading refs (1 or 2) are scalar-prefetch tables used only by index_maps.
    # mask_ref:   (1, TILE_S, 1)  int32 (0 / 1)
    # attack_ref: (1, TILE_S, D)  x dtype (pre-cast in the wrapper)
    # x_ref:      (1, TILE_S, D)  x dtype
    # o_ref:      (1, TILE_S, D)  x dtype
    mask_ref, attack_ref, x_ref, o_ref = refs[-4:]
    m = mask_ref[...] != 0                       # broadcasts over the lane (D) axis
    o_ref[...] = jnp.where(m, attack_ref[...], x_ref[...])


def _choose_tile_s(seq_len, hidden, itemsize):
    """Pick a seq-tile so 3 streams x 2 buffers x (TILE_S, D) ~ 12 MiB VMEM."""
    target_block_bytes = 2 * 1024 * 1024          # per array, per buffer
    t = target_block_bytes // max(1, hidden * itemsize)
    t = int(max(8, min(t, 1024)))
    t = (t // 8) * 8                              # keep the (8, 128) tiling rule happy
    return max(8, min(t, seq_len))


def _masked_replace(x, attack, mask, *, tile_s=None):
    """out = where(mask[..., None], attack.astype(x.dtype), x) via pallas_call."""
    B, S, D = x.shape
    B_a = attack.shape[0]
    B_m = mask.shape[0]
    assert attack.shape[1] == S and attack.shape[2] == D
    assert mask.shape[1] == S
    assert B_a in (1, B) and B_m in (1, B)

    # Pre-cast once: stream attack from HBM at x's width.
    attack = attack.astype(x.dtype)
    mask = mask.astype(bool)

    if tile_s is None:
        tile_s = _choose_tile_s(S, D, x.dtype.itemsize)
    if tile_s >= S:
        tile_s = S                                # full axis -> no divisibility rule
    else:
        tile_s = max(8, (tile_s // 8) * 8)        # second-minor dim must be 8-aligned
        tile_s = min(tile_s, S)

    num_tiles = -(-S // tile_s)
    s_pad = num_tiles * tile_s
    pad = s_pad - S

    a_b0 = (B_a == 1)
    m_b0 = (B_m == 1)

    # The attack mask is a module buffer -> concrete at trace time in normal use.
    try:
        mask_np = np.asarray(mask)
    except Exception:                              # traced mask -> dynamic fallback
        mask_np = None

    # -----------------------------------------------------------------------
    # Static path: sparse grid over masked tiles only (skips all HBM traffic
    # for unmasked tiles; skips the x read for fully-masked tiles).
    # -----------------------------------------------------------------------
    if mask_np is not None:
        mask_pad_np = np.pad(mask_np, ((0, 0), (0, pad))) if pad else mask_np
        tiles_view = mask_pad_np.reshape(B_m, num_tiles, tile_s)
        tile_any_np = tiles_view.any(axis=(0, 2))             # union over batch rows
        masked_tiles = np.nonzero(tile_any_np)[0].astype(np.int32)
        n_masked = int(masked_tiles.size)
        if n_masked == 0:
            return x                                          # nothing to replace

        # Per-(mask-batch, masked-tile) x-fetch index: fully-masked tiles reuse
        # the previously fetched x block so Pallas suppresses the x DMA (the
        # all-ones mask makes the select ignore the stale contents).
        tile_full_np = tiles_view.all(axis=2)                 # (B_m, num_tiles)
        xfetch_np = np.empty((B_m, n_masked), dtype=np.int32)
        for bm in range(B_m):
            prev = int(masked_tiles[0])
            for j, t in enumerate(masked_tiles):
                if not tile_full_np[bm, t]:
                    prev = int(t)
                xfetch_np[bm, j] = prev

        if pad:
            x_p = jnp.pad(x, ((0, 0), (0, pad), (0, 0)))
            attack_p = jnp.pad(attack, ((0, 0), (0, pad), (0, 0)))
        else:
            x_p, attack_p = x, attack
        mask_i32 = jnp.asarray(mask_pad_np, dtype=jnp.int32)[:, :, None]  # (B_m, S_pad, 1)

        tiles_dev = jnp.asarray(masked_tiles)                  # (n_masked,)  int32
        xfetch_dev = jnp.asarray(xfetch_np)                    # (B_m, n_masked) int32

        def mask_index(b, j, tiles_ref, xfetch_ref):
            return (0 if m_b0 else b, tiles_ref[j], 0)

        def attack_index(b, j, tiles_ref, xfetch_ref):
            return (0 if a_b0 else b, tiles_ref[j], 0)

        def x_index(b, j, tiles_ref, xfetch_ref):
            return (b, xfetch_ref[0 if m_b0 else b, j], 0)

        def out_index(b, j, tiles_ref, xfetch_ref):
            return (b, tiles_ref[j], 0)

        out = pl.pallas_call(
            _gd_adversary_kernel,
            out_shape=jax.ShapeDtypeStruct((B, s_pad, D), x.dtype),
            grid_spec=pltpu.PrefetchScalarGridSpec(
                num_scalar_prefetch=2,
                grid=(B, n_masked),
                in_specs=[
                    pl.BlockSpec((1, tile_s, 1), mask_index),    # mask
                    pl.BlockSpec((1, tile_s, D), attack_index),  # attack
                    pl.BlockSpec((1, tile_s, D), x_index),       # x (DMA skipped on fully-masked tiles)
                ],
                out_specs=pl.BlockSpec((1, tile_s, D), out_index),
            ),
            # flattened inputs: 0=tiles, 1=xfetch, 2=mask, 3=attack, 4=x
            input_output_aliases={4: 0},
            compiler_params=pltpu.CompilerParams(
                dimension_semantics=("parallel", "arbitrary"),
            ),
        )(tiles_dev, xfetch_dev, mask_i32, attack_p, x_p)

        if pad:
            out = out[:, :S, :]
        return out

    # -----------------------------------------------------------------------
    # Dynamic fallback: mask is traced. Full grid over all tiles; attack DMA is
    # still skipped for unmasked tiles via a cummax fetch-index table.
    # -----------------------------------------------------------------------
    if pad:
        x = jnp.pad(x, ((0, 0), (0, pad), (0, 0)))
        attack = jnp.pad(attack, ((0, 0), (0, pad), (0, 0)))
        mask = jnp.pad(mask, ((0, 0), (0, pad)))   # padded rows unmasked -> pass-through

    tile_any = mask.reshape(B_m, num_tiles, tile_s).any(axis=-1)         # (B_m, T)
    tile_idx = jnp.arange(num_tiles, dtype=jnp.int32)[None, :]
    fetch_idx = jnp.maximum(
        lax.cummax(jnp.where(tile_any, tile_idx, -1), axis=1), 0
    ).astype(jnp.int32)                                                   # (B_m, T)
    mask_i32 = mask.astype(jnp.int32)[:, :, None]                         # (B_m, S_pad, 1)

    def mask_index(b, s, fetch_ref):
        return (0 if m_b0 else b, s, 0)

    def attack_index(b, s, fetch_ref):
        bm = 0 if m_b0 else b
        return (0 if a_b0 else b, fetch_ref[bm, s], 0)

    def x_index(b, s, fetch_ref):
        return (b, s, 0)

    out = pl.pallas_call(
        _gd_adversary_kernel,
        out_shape=jax.ShapeDtypeStruct((B, s_pad, D), x.dtype),
        grid_spec=pltpu.PrefetchScalarGridSpec(
            num_scalar_prefetch=1,
            grid=(B, num_tiles),
            in_specs=[
                pl.BlockSpec((1, tile_s, 1), mask_index),    # mask
                pl.BlockSpec((1, tile_s, D), attack_index),  # attack (DMA-skipped when unmasked)
                pl.BlockSpec((1, tile_s, D), x_index),       # x
            ],
            out_specs=pl.BlockSpec((1, tile_s, D), x_index),
        ),
        # flattened inputs: 0=fetch_idx, 1=mask, 2=attack, 3=x
        input_output_aliases={3: 0},
        compiler_params=pltpu.CompilerParams(
            dimension_semantics=("parallel", "parallel"),
        ),
    )(fetch_idx, mask_i32, attack, x)

    if pad:
        out = out[:, :S, :]
    return out


# ---------------------------------------------------------------------------
# GDAdversary: parameter setup (plain JAX glue) + forward (Pallas)
# ---------------------------------------------------------------------------
class GDAdversary:
    def __init__(self, dim, epsilon, attack_mask, embedding_space=None, key=None,
                 dtype=jnp.float32):
        self.epsilon = float(epsilon)
        self.attack_mask = jnp.asarray(attack_mask, dtype=bool)
        if key is None:
            key = jax.random.PRNGKey(0)
        s_mask = self.attack_mask.shape[1]

        if embedding_space is None:
            # Torch zero-init branch; clip_attack then L2-projects onto the eps ball.
            self.embedding_space = None
            self.attack = jnp.zeros((self.attack_mask.shape[0], s_mask, dim), dtype=dtype)
        else:
            self.embedding_space = jnp.asarray(embedding_space, dtype=dtype)
            vocab = self.embedding_space.shape[0]
            random_indices = jax.random.randint(key, (1, s_mask), 0, vocab)
            self.attack = self.embedding_space[random_indices]      # (1, S_mask, dim)
        self.clip_attack()

    def clip_attack(self):
        if self.embedding_space is None:
            norms = jnp.linalg.norm(self.attack, axis=-1, keepdims=True)
            scale = jnp.maximum(norms / self.epsilon, 1.0)
            self.attack = self.attack / scale
        else:
            # Nearest-embedding projection via ||a-e||^2 = ||a||^2 - 2 a.e + ||e||^2
            # (argmin over e; the ||a||^2 term is constant).  O(S*V) memory —
            # never materialises an (S, V, D) tensor.
            emb = self.embedding_space                              # (V, D)
            b_a, s_a, _ = self.attack.shape
            atk = self.attack.reshape(b_a * s_a, -1)
            d2 = jnp.sum(emb * emb, axis=-1)[None, :] - 2.0 * (atk @ emb.T)
            closest = jnp.argmin(d2, axis=-1)                       # (B_a*S,)
            self.attack = emb[closest].reshape(self.attack.shape)

    def forward(self, x):
        # x: (B, S, D)
        if x.shape[1] == 1 and self.attack.shape[1] != 1:
            return x
        S = x.shape[1]
        mask = self.attack_mask[:, :S]
        if S == self.attack_mask.shape[1]:
            attack = self.attack
        else:
            # "run only on suffix" branch: same masked replacement on the sliced attack.
            # TODO(synk): the torch branch also np.save()s the masked perturbation rows
            # to disk; file I/O has no Pallas/JAX equivalent and is omitted.
            attack = self.attack[:, :S, :]
        return _masked_replace(x, attack, mask)

    __call__ = forward


# ---------------------------------------------------------------------------
# Pure-JAX reference for correctness checks
# ---------------------------------------------------------------------------
def _reference_forward(x, attack, mask):
    return jnp.where(mask[..., None], attack.astype(x.dtype), x)


if __name__ == "__main__":
    key = jax.random.PRNGKey(0)
    k_x, k_emb, k_init, k_x2, k_a2, k_x3, k_a3, k_x5, k_a5 = jax.random.split(key, 9)

    # --- main test: shapes consistent with the module (attack batch == 1) ----
    B, S, D, V = 1, 8, 128, 16
    x = jax.random.normal(k_x, (B, S, D), dtype=jnp.float32)
    embedding_space = jax.random.normal(k_emb, (V, D), dtype=jnp.float32)
    attack_mask = jnp.arange(S)[None, :] < (S // 2)                  # (1, S) bool

    adv = GDAdversary(dim=D, epsilon=1.0, attack_mask=attack_mask,
                      embedding_space=embedding_space, key=k_init)

    out = jax.block_until_ready(adv(x))
    ref = _reference_forward(x, adv.attack, attack_mask)
    assert out.shape == x.shape and out.dtype == x.dtype
    assert jnp.array_equal(out, ref), "mismatch vs reference (full-seq branch)"

    # --- early-return branch (x seq == 1, attack seq != 1) -------------------
    x1 = x[:, :1, :]
    out1 = jax.block_until_ready(adv(x1))
    assert jnp.array_equal(out1, x1)

    # --- "run only on suffix" branch (x seq shorter than attack seq) ---------
    S_suf = 6
    x_suf = x[:, :S_suf, :]
    out_suf = jax.block_until_ready(adv(x_suf))
    ref_suf = _reference_forward(x_suf, adv.attack[:, :S_suf, :], attack_mask[:, :S_suf])
    assert jnp.array_equal(out_suf, ref_suf), "mismatch vs reference (suffix branch)"

    # --- multi-tile path: padding, bf16 cast, sparse masked-tile grid --------
    B2, S2, D2 = 2, 20, 128
    x2 = jax.random.normal(k_x2, (B2, S2, D2), dtype=jnp.bfloat16)
    atk2 = jax.random.normal(k_a2, (B2, S2, D2), dtype=jnp.float32)
    rows = jnp.arange(S2)
    mask2 = jnp.stack([(rows >= 10) & (rows < 14), rows < 3], axis=0)  # sparse mask
    out2 = jax.block_until_ready(_masked_replace(x2, atk2, mask2, tile_s=8))
    ref2 = _reference_forward(x2, atk2, mask2)
    assert out2.shape == x2.shape and out2.dtype == x2.dtype
    assert jnp.array_equal(out2, ref2), "mismatch vs reference (multi-tile branch)"

    # --- dynamic fallback path (mask traced under jit) ------------------------
    out4 = jax.block_until_ready(
        jax.jit(lambda a, b, m: _masked_replace(a, b, m, tile_s=8))(x2, atk2, mask2))
    assert jnp.array_equal(out4, ref2), "mismatch vs reference (traced-mask branch)"

    # --- batch-1 mask / attack broadcast against batch-B x -------------------
    B3, S3, D3 = 3, 16, 128
    x3 = jax.random.normal(k_x3, (B3, S3, D3), dtype=jnp.bfloat16)
    atk3 = jax.random.normal(k_a3, (1, S3, D3), dtype=jnp.float32)
    mask3 = (jnp.arange(S3)[None, :] >= 12)                           # (1, S3)
    out3 = jax.block_until_ready(_masked_replace(x3, atk3, mask3, tile_s=8))
    ref3 = _reference_forward(x3, atk3, mask3)
    assert jnp.array_equal(out3, ref3), "mismatch vs reference (broadcast branch)"

    # --- fully-masked tiles (x-read DMA skip path) ----------------------------
    B5, S5, D5 = 2, 16, 128
    x5 = jax.random.normal(k_x5, (B5, S5, D5), dtype=jnp.bfloat16)
    atk5 = jax.random.normal(k_a5, (1, S5, D5), dtype=jnp.float32)
    mask5 = jnp.ones((1, S5), dtype=bool)
    out5 = jax.block_until_ready(_masked_replace(x5, atk5, mask5, tile_s=8))
    ref5 = _reference_forward(x5, atk5, mask5)
    assert jnp.array_equal(out5, ref5), "mismatch vs reference (fully-masked branch)"

    # --- all-false mask (no masked tiles -> pass-through) ---------------------
    mask6 = jnp.zeros((1, S5), dtype=bool)
    out6 = jax.block_until_ready(_masked_replace(x5, atk5, mask6, tile_s=8))
    assert jnp.array_equal(out6, x5), "mismatch vs reference (all-false branch)"

    print("KERNEL_OK")
</pallas_src>

<mosaic_0001>
module attributes {stable_mosaic.version = 11 : i64} {
  func.func @_gd_adversary_kernel(%arg0: i32, %arg1: i32, %arg2: memref<1xi32, #tpu.memory_space<smem>>, %arg3: memref<1x1xi32, #tpu.memory_space<smem>>, %arg4: memref<1x8x1xi32, #tpu.memory_space<vmem>>, %arg5: memref<1x8x128xf32, #tpu.memory_space<vmem>>, %arg6: memref<1x8x128xf32, #tpu.memory_space<vmem>>, %arg7: memref<1x8x128xf32, #tpu.memory_space<vmem>>) attributes {dimension_semantics = [#tpu.dimension_semantics<parallel>, #tpu.dimension_semantics<arbitrary>], iteration_bounds = array<i64: 1, 1>, scalar_prefetch = 2 : i64, scratch_operands = 0 : i64, tpu.core_type = #tpu.core_type<tc>, window_params = [{transform_indices = @transform_0, window_bounds = array<i64: 1, 8, 1>}, {transform_indices = @transform_1, window_bounds = array<i64: 1, 8, 128>}, {transform_indices = @transform_2, window_bounds = array<i64: 1, 8, 128>}, {transform_indices = @transform_3, window_bounds = array<i64: 1, 8, 128>}]} {
    %c0 = arith.constant 0 : index
    %c0_0 = arith.constant 0 : index
    %c0_1 = arith.constant 0 : index
    %0 = vector.load %arg4[%c0, %c0_0, %c0_1] : memref<1x8x1xi32, #tpu.memory_space<vmem>>, vector<1x8x1xi32>
    %c0_i32 = arith.constant 0 : i32
    %1 = vector.broadcast %c0_i32 : i32 to vector<1x8x1xi32>
    %2 = arith.cmpi ne, %0, %1 : vector<1x8x1xi32>
    %c0_2 = arith.constant 0 : index
    %c0_3 = arith.constant 0 : index
    %c0_4 = arith.constant 0 : index
    %3 = vector.load %arg5[%c0_2, %c0_3, %c0_4] : memref<1x8x128xf32, #tpu.memory_space<vmem>>, vector<1x8x128xf32>
    %c0_5 = arith.constant 0 : index
    %c0_6 = arith.constant 0 : index
    %c0_7 = arith.constant 0 : index
    %4 = vector.load %arg6[%c0_5, %c0_6, %c0_7] : memref<1x8x128xf32, #tpu.memory_space<vmem>>, vector<1x8x128xf32>
    %5 = vector.shape_cast %2 : vector<1x8x1xi1> to vector<1x8x1xi1>
    %6 = vector.broadcast %5 : vector<1x8x1xi1> to vector<1x8x128xi1>
    %7 = arith.select %6, %3, %4 : vector<1x8x128xi1>, vector<1x8x128xf32>
    %c0_8 = arith.constant 0 : index
    %c0_9 = arith.constant 0 : index
    %c0_10 = arith.constant 0 : index
    %8 = vector.load %arg7[%c0_8, %c0_9, %c0_10] : memref<1x8x128xf32, #tpu.memory_space<vmem>>, vector<1x8x128xf32>
    tpu.vector_store %arg7[%c0_8, %c0_9, %c0_10], %7 {strides = array<i32>} : memref<1x8x128xf32, #tpu.memory_space<vmem>>, vector<1x8x128xf32>,
    return
  }
  func.func @transform_0(%arg0: i32, %arg1: i32, %arg2: memref<1xi32, #tpu.memory_space<smem>>, %arg3: memref<1x1xi32, #tpu.memory_space<smem>>) -> (i32, i32, i32) {
    %0 = arith.index_cast %arg1 : i32 to index
    %1 = memref.load %arg2[%0] : memref<1xi32, #tpu.memory_space<smem>>
    %c0_i32 = arith.constant 0 : i32
    %c0_i32_0 = arith.constant 0 : i32
    %c0_i32_1 = arith.constant 0 : i32
    return %c0_i32, %1, %c0_i32_0 : i32, i32, i32
  }
  func.func @transform_1(%arg0: i32, %arg1: i32, %arg2: memref<1xi32, #tpu.memory_space<smem>>, %arg3: memref<1x1xi32, #tpu.memory_space<smem>>) -> (i32, i32, i32) {
    %0 = arith.index_cast %arg1 : i32 to index
    %1 = memref.load %arg2[%0] : memref<1xi32, #tpu.memory_space<smem>>
    %c0_i32 = arith.constant 0 : i32
    %c0_i32_0 = arith.constant 0 : i32
    %c0_i32_1 = arith.constant 0 : i32
    return %c0_i32, %1, %c0_i32_0 : i32, i32, i32
  }
  func.func @transform_2(%arg0: i32, %arg1: i32, %arg2: memref<1xi32, #tpu.memory_space<smem>>, %arg3: memref<1x1xi32, #tpu.memory_space<smem>>) -> (i32, i32, i32) {
    %c0 = arith.constant 0 : index
    %0 = arith.index_cast %arg1 : i32 to index
    %1 = memref.load %arg3[%c0, %0] : memref<1x1xi32, #tpu.memory_space<smem>>
    %c0_i32 = arith.constant 0 : i32
    %c0_i32_0 = arith.constant 0 : i32
    return %arg0, %1, %c0_i32 : i32, i32, i32
  }
  func.func @transform_3(%arg0: i32, %arg1: i32, %arg2: memref<1xi32, #tpu.memory_space<smem>>, %arg3: memref<1x1xi32, #tpu.memory_space<smem>>) -> (i32, i32, i32) {
    %0 = arith.index_cast %arg1 : i32 to index
    %1 = memref.load %arg2[%0] : memref<1xi32, #tpu.memory_space<smem>>
    %c0_i32 = arith.constant 0 : i32
    %c0_i32_0 = arith.constant 0 : i32
    return %arg0, %1, %c0_i32 : i32, i32, i32
  }
}

</mosaic_0001>

<bundles_post_ra>
// kernel: tpu_custom_call.1
= control target key start
LH: loop header
LB: loop body
LE: loop exit
PB: predicated region body
PF: predicated region fallthrough
CT: control target
= control target key end

     0   :  { %12 = vsyncpa [#allocation6], 0  ;;  %s244_s0 = inlined_call_operand.<no memory space> [shape: s32[1], index: 0, kind: input, shape index: {}]   ;;  %s245_s1 = inlined_call_operand.<no memory space> [shape: s32[1,1], index: 1, kind: input, shape index: {}]   ;;  %s246_s2 = inlined_call_operand.vmem [shape: s32[1,8,1], index: 2, kind: input, shape index: {}]   ;;  %s247_s3 = inlined_call_operand.vmem [shape: f32[1,8,128], index: 3, kind: input, shape index: {}]   ;;  %s248_s4 = inlined_call_operand.hbm [shape: f32[1,8,128], index: 4, kind: input, shape index: {}, may-alias: {4,5}]   ;;  %s249_s5 = inlined_call_operand.hbm [shape: f32[1,8,128], index: 5, kind: output, shape index: {}, may-alias: {4,5}]  }
   0x1   :  { %13 = vsyncpa [#allocation7], 0  ;;  %s115_s20 = sshll.u32 %s245_s1, 7  ;;  %s175_s24 = smov [#allocation5]  }
   0x2   :  { %s37_s23 = scalar_lea.hbm %s248_s4, %s115_s20  ;;  %s39_s25 = sshll.u32 %s175_s24, 4  ;;  %s40_s25 = int_to_ptr.vmem [resolvable:$true] %s39_s25 }
   0x3   :  { %s123_s26 = scalar_lea.hbm %s37_s23, 128  ;;  %s125_s29 = scalar_lea.hbm %s248_s4, 128 }
   0x4   :  { %p124_p0 = scmp.ne.s32.totalorder %s37_s23, %s123_s26  ;;  %p126_p1 = scmp.lt.u32.totalorder %s37_s23, %s248_s4 }
   0x5   :  { %p127_p2 = scmp.lt.u32.totalorder %s125_s29, %s123_s26  ;;  %p129_p4 = scmp.lt.u32.totalorder %s123_s26, %s37_s23 }
   0x7   :  { %p128_p3 = por %p127_p2, %p126_p1 }
   0x9   :  { %p130_p5 = por %p129_p4, %p128_p3 }
   0xb   :  { %p131_p6 = pnand %p130_p5, %p124_p0 }
   0xd   :  { %134 = shalt.err (!%p131_p6)
}
   0xe   :  { %s135_s1 = scalar_lea.vmem %s40_s25, 128  ;;  %p140_p8 = scmp.lt.s32.totalorder %s40_s25, %s40_s25 }
   0xf   :  { %p136_p7 = scmp.ne.s32.totalorder %s40_s25, %s135_s1  ;;  %p141_p9 = scmp.lt.s32.totalorder %s135_s1, %s135_s1 }
  0x11   :  { %p142_p10 = por %p141_p9, %p140_p8 }
  0x13   :  { %p143_p11 = pnand %p142_p10, %p136_p7 }
  0x15   :  { %146 = shalt.err (!%p143_p11)
}
  0x16   :  { %42 = dma.hbm_to_vmem [thread:$0]  %s37_s23, 128, %s40_s25, [#allocation6]  }
  0x17   :  { %171 = dma.done.wait [#allocation6], 128  }
  0x18   :  { %172 = vsyncadd [#allocation6], 4294967168  ;;  %p57_p12 = scmp.lt.s32.totalorder %s244_s0, 0  ;;  %v176_v0 = vmov 0   ;;  %s118_s20 = sshll.u32 %s244_s0, 7  ;;  %v73_v4 = vld [vmem:[#allocation5] sm:$0xff] }
  0x19   :  { %122 = vset.pattern.permute.xlu0 %v176_v0  ;;  %s177_s21 = smov [#allocation8]   ;;  %s88_s24 = scalar_lea.hbm %s249_s5, %s118_s20 }
  0x1a   :  { %s58_s10 = scalar_select %p57_p12, %s244_s0, 0 }
  0x1b   :  { %s90_s22 = sshll.u32 %s177_s21, 4  ;;  %s91_s22 = int_to_ptr.vmem [resolvable:$true] %s90_s22 }
  0x1c   :  { %s116_s11 = sshll.u32 %s58_s10, 3  ;;  %s147_s25 = scalar_lea.vmem %s91_s22, 128 }
  0x1d   :  { %s60_s14 = scalar_lea.vmem %s246_s2, %s116_s11  ;;  %s66_s17 = scalar_lea.vmem %s247_s3, %s116_s11 }
  0x1e   :  { %v70_v1 = vld [vmem:[%s60_s14] sm:$0xff]  ;;  %p148_p13 = scmp.ne.s32.totalorder %s91_s22, %s147_s25  ;;  %p152_p0 = scmp.lt.s32.totalorder %s91_s22, %s91_s22 }
  0x1f   :  { %vm71_vm0 = vcmp.ne.s32.totalorder %v70_v1, 0  ;;  %v72_v3 = vld [vmem:[%s66_s17] sm:$0xff]  ;;  %p153_p1 = scmp.lt.s32.totalorder %s147_s25, %s147_s25 }
  0x20   :  { %v74_v2 = vsel %vm71_vm0, 1, %v176_v0 }
  0x21   :  { %76 = vperm.xlu0 %122, %v74_v2   ;;  %p154_p2 = por %p153_p1, %p152_p0 }
  0x23   :  { %p155_p3 = pnand %p154_p2, %p148_p13 }
  0xa0   :  { %v77_v5 = vpop.permute.xlu0 %76 }
  0xa1   :  { %vm78_vm1 = vcmp.eq.s32.totalorder %v77_v5, 1 }
  0xa2   :  { %v79_v6 = vsel %vm78_vm1, %v72_v3, %v73_v4 }
  0xa3   :  { %80 = vst [vmem:[#allocation8] sm:$0xff] %v79_v6 }
  0xa4   :  { %158 = shalt.err (!%p155_p3)
}
  0xa5   :  { %s159_s0 = scalar_lea.hbm %s88_s24, 128  ;;  %s161_s27 = scalar_lea.hbm %s249_s5, 128 }
  0xa6   :  { %p160_p4 = scmp.ne.s32.totalorder %s88_s24, %s159_s0  ;;  %p162_p5 = scmp.lt.u32.totalorder %s88_s24, %s249_s5 }
  0xa7   :  { %p163_p6 = scmp.lt.u32.totalorder %s161_s27, %s159_s0  ;;  %p165_p8 = scmp.lt.u32.totalorder %s159_s0, %s88_s24 }
  0xa9   :  { %p164_p7 = por %p163_p6, %p162_p5 }
  0xab   :  { %p166_p9 = por %p165_p8, %p164_p7 }
  0xad   :  { %p167_p10 = pnand %p166_p9, %p160_p4 }
  0xaf   :  { %170 = shalt.err (!%p167_p10)
}
  0xb0   :  { %93 = dma.vmem_to_hbm [thread:$0]  %s91_s22, 128, %s88_s24, [#allocation7]  }
  0xb1   :  { %173 = dma.done.wait [#allocation7], 128  }
  0xb2   :  { %174 = vsyncadd [#allocation7], 4294967168 }
  0xb3   :  { %97 = vsyncpa [#allocation6], 1 }
  0xb4   :  { %98 = vsyncpa [#allocation7], 1 }

</bundles_post_ra>
